<compile_context>
chip_gen: v7x
topology: tpu7x:2x2x1
jax: 0.10.0
libtpu: 0.0.40
codegen_flags: <defaults>
</compile_context>

<pallas_src>
import functools

import jax
import jax.numpy as jnp
from jax.experimental import pallas as pl
from jax.experimental.pallas import tpu as pltpu


def _round_up(x: int, m: int) -> int:
    return ((x + m - 1) // m) * m


def _head_kernel(*refs, apply_dropout: bool):
    """Fused ff2(dropout(ff1(x))) on one batch tile (weights VMEM-resident)."""
    if apply_dropout:
        x_ref, w1_ref, b1_ref, w2_ref, b2_ref, mask_ref, o_ref = refs
    else:
        x_ref, w1_ref, b1_ref, w2_ref, b2_ref, o_ref = refs
        mask_ref = None

    x = x_ref[...]
    # ff1: (TB, in_dim) @ (in_dim, hidden) + (1, hidden); accumulate in f32.
    h = jnp.dot(x, w1_ref[...], preferred_element_type=jnp.float32) + b1_ref[...]

    if apply_dropout:
        # mask is already scaled by 1/(1-p) (0 for dropped units): one VPU
        # multiply, hidden under the MXU work at realistic tile sizes.
        h = h * mask_ref[...]

    # Cast back to input dtype so ff2 runs as a native bf16 x bf16 MXU op when
    # inputs are bf16 (identity for f32); still accumulate in f32.
    h = h.astype(x_ref.dtype)

    # ff2: (TB, hidden) @ (hidden, out_pad) + (1, out_pad); out_pad is
    # lane-dense (multiple of 128) so the store is a full-width vst.
    out = jnp.dot(h, w2_ref[...], preferred_element_type=jnp.float32) + b2_ref[...]
    o_ref[...] = out.astype(o_ref.dtype)


def _make_dropout_mask(key, shape, p: float):
    """Pre-scaled keep mask matching torch.nn.Dropout semantics."""
    p = float(p)
    if p <= 0.0:
        return jnp.ones(shape, jnp.float32)
    if p >= 1.0:  # p == 1 drops everything (avoids 1/(1-p) overflow)
        return jnp.zeros(shape, jnp.float32)
    keep = jax.random.bernoulli(key, 1.0 - p, shape)
    return keep.astype(jnp.float32) * (1.0 / (1.0 - p))


def _resident_spec(block_shape):
    """Constant-index (VMEM-resident) BlockSpec; single-buffered when supported."""
    try:
        return pl.BlockSpec(block_shape, lambda i: (0, 0),
                            pipeline_mode=pl.Buffered(1))
    except Exception:  # older/newer JAX without pipeline_mode support
        return pl.BlockSpec(block_shape, lambda i: (0, 0))


def classification_head(x, w1, b1, w2, b2, *,
                        dropout_prob: float = 0.1, training: bool = False,
                        rng_key=None, dropout_mask=None, batch_tile: int = 128):
    """Pallas wrapper.

    x  : (B, in_dim)
    w1 : (in_dim, hidden)   (hidden = in_dim // 2), stored pre-transposed
    b1 : (hidden,)
    w2 : (hidden, out_dim), stored pre-transposed
    b2 : (out_dim,)
    dropout_mask : optional (B, hidden) pre-scaled keep mask (for determinism);
                   otherwise generated from rng_key when training.
    """
    B, in_dim = x.shape
    hidden = w1.shape[1]
    out_dim = w2.shape[1]
    dtype = x.dtype

    apply_dropout = bool(training) and float(dropout_prob) > 0.0

    # --- tiling / padding for MXU & lane alignment ---
    sublane = {4: 8, 2: 16, 1: 32}.get(jnp.dtype(dtype).itemsize, 8)
    TB = max(sublane, min(int(batch_tile), _round_up(B, sublane)))
    TB = _round_up(TB, sublane)
    B_pad = _round_up(B, TB)
    grid = (B_pad // TB,)

    out_pad = _round_up(out_dim, 128)  # lane-dense output stores

    x_p = x if B_pad == B else jnp.pad(x, ((0, B_pad - B), (0, 0)))
    b1_2d = b1.reshape(1, hidden)
    w2_p = jnp.pad(w2, ((0, 0), (0, out_pad - out_dim)))
    b2_2d = jnp.pad(b2.reshape(1, out_dim), ((0, 0), (0, out_pad - out_dim)))

    in_specs = [
        pl.BlockSpec((TB, in_dim), lambda i: (i, 0)),      # x: streamed per tile
        _resident_spec((in_dim, hidden)),                  # w1: VMEM-resident
        _resident_spec((1, hidden)),                       # b1
        _resident_spec((hidden, out_pad)),                 # w2 (lane-padded)
        _resident_spec((1, out_pad)),                      # b2 (lane-padded)
    ]
    args = [x_p, w1, b1_2d, w2_p, b2_2d]

    if apply_dropout:
        if dropout_mask is not None:
            mask = jnp.asarray(dropout_mask, jnp.float32)
        else:
            if rng_key is None:
                rng_key = jax.random.PRNGKey(0)
            mask = _make_dropout_mask(rng_key, (B, hidden), dropout_prob)
        mask_p = mask if B_pad == B else jnp.pad(mask, ((0, B_pad - B), (0, 0)))
        in_specs.append(pl.BlockSpec((TB, hidden), lambda i: (i, 0)))
        args.append(mask_p)

    kernel = functools.partial(_head_kernel, apply_dropout=apply_dropout)

    out_p = pl.pallas_call(
        kernel,
        out_shape=jax.ShapeDtypeStruct((B_pad, out_pad), dtype),
        grid=grid,
        in_specs=in_specs,
        out_specs=pl.BlockSpec((TB, out_pad), lambda i: (i, 0)),
        compiler_params=pltpu.CompilerParams(
            dimension_semantics=("parallel",),
        ),
    )(*args)

    return out_p[:B, :out_dim]


def init_params(key, in_dim, out_dim):
    """Parameter init mimicking nn.Linear's uniform(-1/sqrt(fan_in), ...)."""
    hidden = in_dim // 2
    k1, k2, k3, k4 = jax.random.split(key, 4)
    bound1 = 1.0 / jnp.sqrt(in_dim)
    bound2 = 1.0 / jnp.sqrt(hidden)
    # Stored pre-transposed: (in_features, out_features)
    w1 = jax.random.uniform(k1, (in_dim, hidden), jnp.float32, -bound1, bound1)
    b1 = jax.random.uniform(k2, (hidden,), jnp.float32, -bound1, bound1)
    w2 = jax.random.uniform(k3, (hidden, out_dim), jnp.float32, -bound2, bound2)
    b2 = jax.random.uniform(k4, (out_dim,), jnp.float32, -bound2, bound2)
    return w1, b1, w2, b2


if __name__ == "__main__":
    in_dim, out_dim, dropout_prob = 32, 8, 0.1
    batch = 2

    key = jax.random.PRNGKey(0)
    kx, kp, kd = jax.random.split(key, 3)
    x = jax.random.normal(kx, (batch, in_dim), jnp.float32)
    w1, b1, w2, b2 = init_params(kp, in_dim, out_dim)

    # Inference-mode forward (dropout = identity), matching module.eval().
    out = classification_head(x, w1, b1, w2, b2,
                              dropout_prob=dropout_prob, training=False)
    out = jax.block_until_ready(out)
    ref = (x @ w1 + b1) @ w2 + b2
    assert out.shape == (batch, out_dim)
    assert jnp.allclose(out, ref, atol=1e-5, rtol=1e-5), "eval mismatch vs reference"

    # Training-mode forward with an explicit deterministic mask so we can check
    # the dropout path against a pure-JAX reference.
    hidden = in_dim // 2
    mask = _make_dropout_mask(kd, (batch, hidden), dropout_prob)
    out_tr = classification_head(x, w1, b1, w2, b2,
                                 dropout_prob=dropout_prob, training=True,
                                 dropout_mask=mask)
    out_tr = jax.block_until_ready(out_tr)
    ref_tr = ((x @ w1 + b1) * mask) @ w2 + b2
    assert out_tr.shape == (batch, out_dim)
    assert jnp.allclose(out_tr, ref_tr, atol=1e-5, rtol=1e-5), "train mismatch vs reference"

    print("KERNEL_OK")
</pallas_src>

<mosaic_0001>
module attributes {stable_mosaic.version = 11 : i64} {
  func.func @_head_kernel(%arg0: i32, %arg1: memref<8x32xf32, #tpu.memory_space<vmem>>, %arg2: memref<32x16xf32, #tpu.memory_space<vmem>>, %arg3: memref<1x16xf32, #tpu.memory_space<vmem>>, %arg4: memref<16x128xf32, #tpu.memory_space<vmem>>, %arg5: memref<1x128xf32, #tpu.memory_space<vmem>>, %arg6: memref<8x128xf32, #tpu.memory_space<vmem>>) attributes {dimension_semantics = [#tpu.dimension_semantics<parallel>], iteration_bounds = array<i64: 1>, scalar_prefetch = 0 : i64, scratch_operands = 0 : i64, tpu.core_type = #tpu.core_type<tc>, window_params = [{transform_indices = @transform_0, window_bounds = array<i64: 8, 32>}, {pipeline_mode = #tpu.pipeline_mode<synchronous>, transform_indices = @transform_1, window_bounds = array<i64: 32, 16>}, {pipeline_mode = #tpu.pipeline_mode<synchronous>, transform_indices = @transform_2, window_bounds = array<i64: 1, 16>}, {pipeline_mode = #tpu.pipeline_mode<synchronous>, transform_indices = @transform_3, window_bounds = array<i64: 16, 128>}, {pipeline_mode = #tpu.pipeline_mode<synchronous>, transform_indices = @transform_4, window_bounds = array<i64: 1, 128>}, {transform_indices = @transform_5, window_bounds = array<i64: 8, 128>}]} {
    %c0 = arith.constant 0 : index
    %c0_0 = arith.constant 0 : index
    %0 = vector.load %arg1[%c0, %c0_0] : memref<8x32xf32, #tpu.memory_space<vmem>>, vector<8x32xf32>
    %c0_1 = arith.constant 0 : index
    %c0_2 = arith.constant 0 : index
    %1 = vector.load %arg2[%c0_1, %c0_2] : memref<32x16xf32, #tpu.memory_space<vmem>>, vector<32x16xf32>
    %cst = arith.constant dense<0.000000e+00> : vector<8x16xf32>
    %2 = tpu.matmul %0, %1, %cst {dimension_numbers = #tpu.dot_dimension_numbers<[1], [0], [0], [1], [0, 0, 1, 1], [], []>} : vector<8x32xf32>, vector<32x16xf32>, vector<8x16xf32> -> vector<8x16xf32>
    %c0_3 = arith.constant 0 : index
    %c0_4 = arith.constant 0 : index
    %3 = vector.load %arg3[%c0_3, %c0_4] : memref<1x16xf32, #tpu.memory_space<vmem>>, vector<1x16xf32>
    %4 = vector.broadcast %3 : vector<1x16xf32> to vector<8x16xf32>
    %5 = arith.addf %2, %4 : vector<8x16xf32>
    %c0_5 = arith.constant 0 : index
    %c0_6 = arith.constant 0 : index
    %6 = vector.load %arg4[%c0_5, %c0_6] : memref<16x128xf32, #tpu.memory_space<vmem>>, vector<16x128xf32>
    %cst_7 = arith.constant dense<0.000000e+00> : vector<8x128xf32>
    %7 = tpu.matmul %5, %6, %cst_7 {dimension_numbers = #tpu.dot_dimension_numbers<[1], [0], [0], [1], [0, 0, 1, 1], [], []>} : vector<8x16xf32>, vector<16x128xf32>, vector<8x128xf32> -> vector<8x128xf32>
    %c0_8 = arith.constant 0 : index
    %c0_9 = arith.constant 0 : index
    %8 = vector.load %arg5[%c0_8, %c0_9] : memref<1x128xf32, #tpu.memory_space<vmem>>, vector<1x128xf32>
    %9 = vector.broadcast %8 : vector<1x128xf32> to vector<8x128xf32>
    %10 = arith.addf %7, %9 : vector<8x128xf32>
    %c0_10 = arith.constant 0 : index
    %c0_11 = arith.constant 0 : index
    %11 = vector.load %arg6[%c0_10, %c0_11] : memref<8x128xf32, #tpu.memory_space<vmem>>, vector<8x128xf32>
    tpu.vector_store %arg6[%c0_10, %c0_11], %10 {strides = array<i32>} : memref<8x128xf32, #tpu.memory_space<vmem>>, vector<8x128xf32>,
    return
  }
  func.func @transform_0(%arg0: i32) -> (i32, i32) {
    %c0_i32 = arith.constant 0 : i32
    %c0_i32_0 = arith.constant 0 : i32
    return %arg0, %c0_i32 : i32, i32
  }
  func.func @transform_1(%arg0: i32) -> (i32, i32) {
    %c0_i32 = arith.constant 0 : i32
    %c0_i32_0 = arith.constant 0 : i32
    %c0_i32_1 = arith.constant 0 : i32
    return %c0_i32, %c0_i32_0 : i32, i32
  }
  func.func @transform_2(%arg0: i32) -> (i32, i32) {
    %c0_i32 = arith.constant 0 : i32
    %c0_i32_0 = arith.constant 0 : i32
    %c0_i32_1 = arith.constant 0 : i32
    return %c0_i32, %c0_i32_0 : i32, i32
  }
  func.func @transform_3(%arg0: i32) -> (i32, i32) {
    %c0_i32 = arith.constant 0 : i32
    %c0_i32_0 = arith.constant 0 : i32
    %c0_i32_1 = arith.constant 0 : i32
    return %c0_i32, %c0_i32_0 : i32, i32
  }
  func.func @transform_4(%arg0: i32) -> (i32, i32) {
    %c0_i32 = arith.constant 0 : i32
    %c0_i32_0 = arith.constant 0 : i32
    %c0_i32_1 = arith.constant 0 : i32
    return %c0_i32, %c0_i32_0 : i32, i32
  }
  func.func @transform_5(%arg0: i32) -> (i32, i32) {
    %c0_i32 = arith.constant 0 : i32
    %c0_i32_0 = arith.constant 0 : i32
    return %arg0, %c0_i32 : i32, i32
  }
}

</mosaic_0001>

<bundles_post_ra>
// kernel: tpu_custom_call.1
= control target key start
LH: loop header
LB: loop body
LE: loop exit
PB: predicated region body
PF: predicated region fallthrough
CT: control target
= control target key end

     0   :  { %v272_v3 = vmov 0.0|0.0   ;;  %vm273_vm0 = vmmov 0   ;;  %v274_v6 = vmov 0.0   ;;  %s345_s0 = inlined_call_operand.vmem [shape: f32[8,32], index: 0, kind: input, shape index: {}]   ;;  %s346_s1 = inlined_call_operand.vmem [shape: f32[32,16], index: 1, kind: input, shape index: {}]   ;;  %s347_s2 = inlined_call_operand.vmem [shape: f32[1,16], index: 2, kind: input, shape index: {}]   ;;  %s348_s3 = inlined_call_operand.vmem [shape: f32[16,128], index: 3, kind: input, shape index: {}]   ;;  %s349_s4 = inlined_call_operand.vmem [shape: f32[1,128], index: 4, kind: input, shape index: {}]   ;;  %s350_s5 = inlined_call_operand.hbm [shape: f32[8,128], index: 5, kind: output, shape index: {}]  }
   0x1   :  { %v22_v0 = vld [vmem:[%s346_s1] sm:$0xff]  ;;  %v23_v1 = vld [vmem:[%s346_s1 + $0x8] sm:$0xff]  ;;  %v24_v2 = vld [vmem:[%s346_s1 + $0x10] sm:$0xff]  ;;  %235 = vmatprep.subr.bf16.mxu0 %v272_v3  ;;  %225 = vmatprep.mubr.msk.f32.mxu0 %vm273_vm0, %v274_v6 }
   0x2   :  { %v236_v4 = vpack.c.bf16 %v23_v1, %v22_v0  ;;  %v25_v5 = vld [vmem:[%s346_s1 + $0x18] sm:$0xff]  ;;  %241 = vmatprep.subr.bf16.mxu1 %v272_v3  ;;  %232 = vmatprep.mubr.msk.f32.mxu1 %vm273_vm0, %v274_v6 }
   0x3   :  { %10 = vsyncpa [#allocation3], 0  ;;  %v239_v7 = vpack.c.bf16 %v25_v5, %v24_v2  ;;  %v21_v8 = vld [vmem:[%s345_s0] sm:$0xff]  ;;  %vm33_vm1 = vcmask 261120   ;;  %v108_v10 = vld [vmem:[%s348_s3 + $0x8] sm:$0xff]  ;;  %vm116_vm2 = vcmask 130048  }
   0x4   :  { %237 = vmatpush3.bf16.msra.mxu0 %v236_v4  ;;  %v107_v9 = vld [vmem:[%s348_s3] sm:$0xff]  ;;  %s275_s9 = smov [#allocation2]  }
   0x5   :  { %238 = vmatprep.subr.bf16.mxu0 %v272_v3  ;;  %v242_v11 = vpack.c.bf16 %v108_v10, %v107_v9  ;;  %v205_v12 = vld [vmem:[%s347_s2] ss:$0 sm:$0xff]  ;;  %s197_s10 = sshll.u32 %s275_s9, 4  ;;  %s198_s10 = int_to_ptr.vmem [resolvable:$true] %s197_s10 }
   0x6   :  { %v207_v16 = vld [vmem:[%s349_s4] ss:$0 sm:$0xff]  ;;  %s248_s3 = scalar_lea.vmem %s198_s10, 128  ;;  %p253_p1 = scmp.lt.s32.totalorder %s198_s10, %s198_s10 }
   0x7   :  { %243 = vmatpush3.bf16.msra.mxu1 %v242_v11  ;;  %p249_p0 = scmp.ne.s32.totalorder %s198_s10, %s248_s3  ;;  %p254_p2 = scmp.lt.s32.totalorder %s248_s3, %s248_s3 }
   0x8   :  { %240 = vmatpush3.bf16.msra.mxu0 %v239_v7 }
   0x9   :  { %p255_p3 = por %p254_p2, %p253_p1 }
   0xb   :  { %226 = vmatmul.mubr.msk.f32.vlgmr.msra.gmra.mrb[0].mxu0 %vm33_vm1, %v21_v8  ;;  %p256_p4 = pnand %p255_p3, %p249_p0 }
  0xde   :  { %v103_v13 = vpop.f32.mrb[0].mxu0 }
  0xdf   :  { %v104_v14 = vadd.f32 %v205_v12, %v103_v13  ;;  %v227_v15 = vpop.f32.mrb[1].mxu0 }
  0xe1   :  { %233 = vmatmul.mubr.msk.f32.vlgmr.msra.gmra.mrb[0].mxu1 %vm116_vm2, %v104_v14 }
 0x1b4   :  { %v186_v17 = vpop.f32.mrb[0].mxu1 }
 0x1b5   :  { %v187_v18 = vadd.f32 %v207_v16, %v186_v17  ;;  %v234_v19 = vpop.f32.mrb[1].mxu1 }
 0x1b7   :  { %190 = vst [vmem:[#allocation2] sm:$0xff] %v187_v18 }
 0x1b8   :  { %259 = shalt.err (!%p256_p4)
}
 0x1b9   :  { %s260_s12 = scalar_lea.hbm %s350_s5, 128 }
 0x1ba   :  { %p261_p5 = scmp.ne.s32.totalorder %s350_s5, %s260_s12  ;;  %p264_p6 = scmp.lt.u32.totalorder %s260_s12, %s350_s5 }
 0x1bc   :  { %p266_p7 = pnand %p264_p6, %p261_p5 }
 0x1be   :  { %269 = shalt.err (!%p266_p7)
}
 0x1bf   :  { %200 = dma.vmem_to_hbm [thread:$0]  %s198_s10, 128, %s350_s5, [#allocation3]  }
 0x1c0   :  { %270 = dma.done.wait [#allocation3], 128  }
 0x1c1   :  { %271 = vsyncadd [#allocation3], 4294967168 }
 0x1c2   :  { %204 = vsyncpa [#allocation3], 1 }

</bundles_post_ra>
